<compile_context>
chip_gen: v6e
topology: v6e:2x2x1
jax: 0.10.0
libtpu: 0.0.40
codegen_flags: <defaults>
</compile_context>

<pallas_src>
import functools
import math

import jax
import jax.numpy as jnp
from jax import lax
from jax.experimental import pallas as pl
from jax.experimental.pallas import tpu as pltpu


def _round_up(x: int, m: int) -> int:
    return ((x + m - 1) // m) * m


def _embed_gather_kernel(ids_ref, table_ref, out_ref, gbuf, sems, *,
                         tok_blk, window, scale):
    # ids_ref  : SMEM int32[n_pad]          -- scalar-prefetched token ids
    # table_ref: HBM  dtype[vocab, emb]     -- raw HBM ref (no auto-DMA)
    # out_ref  : VMEM dtype[tok_blk, emb]   -- output tile for this grid step
    # gbuf     : VMEM dtype[tok_blk, emb]   -- gather landing buffer
    # sems     : DMA semaphores [window]    -- rolling window of row copies
    base = pl.program_id(0) * tok_blk

    def issue(r):
        tok = ids_ref[base + r]
        pltpu.make_async_copy(
            table_ref.at[pl.ds(tok, 1)], gbuf.at[pl.ds(r, 1)],
            sems.at[r % window]).start()

    def wait_row(r):
        # The wait descriptor only needs matching transfer size + sem slot.
        pltpu.make_async_copy(
            table_ref.at[pl.ds(0, 1)], gbuf.at[pl.ds(r, 1)],
            sems.at[r % window]).wait()

    # Prime `window` row DMAs (>= 8 copies in flight).
    def prime(r, carry):
        issue(r)
        return carry

    lax.fori_loop(0, window, prime, 0)

    # Rolling window: wait for row r, refill its semaphore slot with row r+W.
    def body(r, carry):
        wait_row(r)

        @pl.when(r + window < tok_blk)
        def _():
            issue(r + window)

        return carry

    lax.fori_loop(0, tok_blk, body, 0)

    # One lane-dense store; sqrt(emb) applied on the VPU (exact vs reference).
    out_ref[...] = (gbuf[...] * scale).astype(out_ref.dtype)


def token_embedding(tokens, emb_table, *, tok_blk=None):
    """tokens: int array (any shape); emb_table: (vocab, emb)."""
    vocab_size, emb_size = emb_table.shape
    scale = math.sqrt(emb_size)

    orig_shape = tokens.shape
    flat = tokens.reshape(-1).astype(jnp.int32)            # tokens.long()
    # jnp.take clamps OOB ids; torch nn.Embedding would raise. Clamp so the
    # row DMA address is always in-bounds.
    flat = jnp.clip(flat, 0, vocab_size - 1)
    n = flat.shape[0]

    bytes_per_row = emb_size * emb_table.dtype.itemsize
    if tok_blk is None:
        # gather buffer + double-buffered out tile ~= 3 * tok_blk * row_bytes;
        # keep well inside the default scoped-VMEM limit on all generations
        # while using large blocks to amortize the ~0.35us/grid-step overhead.
        budget = 24 * 1024 * 1024
        max_blk = max(8, (budget // (3 * bytes_per_row)) // 8 * 8)
        tok_blk = max(8, min(512, max_blk, _round_up(n, 8)))

    num_blocks = pl.cdiv(n, tok_blk)
    n_pad = num_blocks * tok_blk
    # Padded id slots gather row 0; their output rows lie past n, so Pallas
    # masks those stores (only the final partial block is masked).
    ids = jnp.pad(flat, (0, n_pad - n))

    window = min(16, tok_blk)      # rolling window of in-flight row DMAs

    kernel = functools.partial(_embed_gather_kernel, tok_blk=tok_blk,
                               window=window, scale=scale)

    out = pl.pallas_call(
        kernel,
        out_shape=jax.ShapeDtypeStruct((n, emb_size), emb_table.dtype),
        grid_spec=pltpu.PrefetchScalarGridSpec(
            num_scalar_prefetch=1,
            grid=(num_blocks,),
            in_specs=[pl.BlockSpec(memory_space=pl.ANY)],   # table stays in HBM
            out_specs=pl.BlockSpec((tok_blk, emb_size), lambda i, ids: (i, 0)),
            scratch_shapes=[
                pltpu.VMEM((tok_blk, emb_size), emb_table.dtype),
                pltpu.SemaphoreType.DMA((window,)),
            ],
        ),
        compiler_params=pltpu.CompilerParams(
            dimension_semantics=("parallel",),
        ),
    )(ids, emb_table)

    return out.reshape(*orig_shape, emb_size)


if __name__ == "__main__":
    vocab_size = 64
    emb_size = 128
    seq, batch = 8, 2

    key = jax.random.PRNGKey(0)
    k_emb, k_tok = jax.random.split(key)

    # deterministic synthetic parameters (nn.Embedding weight ~ N(0, 1))
    emb_table = jax.random.normal(k_emb, (vocab_size, emb_size), dtype=jnp.float32)
    tokens = jax.random.randint(k_tok, (seq, batch), 0, vocab_size, dtype=jnp.int32)

    out = token_embedding(tokens, emb_table)
    out = jax.block_until_ready(out)

    ref = jnp.take(emb_table, tokens, axis=0) * math.sqrt(emb_size)
    assert out.shape == (seq, batch, emb_size)
    assert jnp.allclose(out, ref, atol=1e-5, rtol=1e-5)

    # Second check: multi-block grid with a partial (masked) last block and a
    # rolling DMA window smaller than the block.
    k_tok2 = jax.random.fold_in(k_tok, 1)
    tokens2 = jax.random.randint(k_tok2, (37, 5), 0, vocab_size, dtype=jnp.int32)
    out2 = jax.block_until_ready(token_embedding(tokens2, emb_table, tok_blk=64))
    ref2 = jnp.take(emb_table, tokens2, axis=0) * math.sqrt(emb_size)
    assert out2.shape == (37, 5, emb_size)
    assert jnp.allclose(out2, ref2, atol=1e-5, rtol=1e-5)

    print("KERNEL_OK")
</pallas_src>

<mosaic_0001>
module attributes {stable_mosaic.version = 11 : i64} {
  func.func @_embed_gather_kernel(%arg0: i32, %arg1: memref<16xi32, #tpu.memory_space<smem>>, %arg2: memref<64x128xf32, #tpu.memory_space<any>>, %arg3: memref<16x128xf32, #tpu.memory_space<vmem>>, %arg4: memref<16x128xf32, #tpu.memory_space<vmem>>, %arg5: memref<16x!tpu.dma_semaphore, #tpu.memory_space<semaphore_mem>>) attributes {dimension_semantics = [#tpu.dimension_semantics<parallel>], iteration_bounds = array<i64: 1>, scalar_prefetch = 1 : i64, scratch_operands = 2 : i64, tpu.core_type = #tpu.core_type<tc>, window_params = [{}, {transform_indices = @transform_1, window_bounds = array<i64: 16, 128>}]} {
    %c16_i32 = arith.constant 16 : i32
    %0 = arith.muli %arg0, %c16_i32 : i32
    %c0_i32 = arith.constant 0 : i32
    %c16_i32_0 = arith.constant 16 : i32
    %1 = arith.addi %c0_i32, %c16_i32_0 : i32
    %c1_i32 = arith.constant 1 : i32
    scf.for %arg6 = %c0_i32 to %1 step %c1_i32  : i32 {
      %7 = arith.addi %0, %arg6 : i32
      %8 = arith.index_cast %7 : i32 to index
      %9 = memref.load %arg1[%8] : memref<16xi32, #tpu.memory_space<smem>>
      %c16_i32_9 = arith.constant 16 : i32
      %c0_i32_10 = arith.constant 0 : i32
      %10 = arith.cmpi eq, %c16_i32_9, %c0_i32_10 : i32
      %c1_i32_11 = arith.constant 1 : i32
      %11 = arith.select %10, %c1_i32_11, %c16_i32_9 : i32
      %12 = arith.remsi %arg6, %11 : i32
      %c0_i32_12 = arith.constant 0 : i32
      %13 = arith.cmpi ne, %12, %c0_i32_12 : i32
      %c0_i32_13 = arith.constant 0 : i32
      %14 = arith.cmpi slt, %12, %c0_i32_13 : i32
      %c0_i32_14 = arith.constant 0 : i32
      %15 = arith.cmpi slt, %11, %c0_i32_14 : i32
      %16 = arith.xori %14, %15 : i1
      %17 = arith.andi %16, %13 : i1
      %18 = arith.addi %12, %11 : i32
      %19 = arith.select %17, %18, %12 : i32
      %c0_i32_15 = arith.constant 0 : i32
      %20 = tpu.memref_slice %arg2[%9, %c0_i32_15] : memref<64x128xf32, #tpu.memory_space<any>> -> memref<1x128xf32, #tpu.memory_space<any>>
      %c0_i32_16 = arith.constant 0 : i32
      %21 = tpu.memref_slice %arg4[%arg6, %c0_i32_16] : memref<16x128xf32, #tpu.memory_space<vmem>> -> memref<1x128xf32, #tpu.memory_space<vmem>>
      %22 = tpu.memref_slice %arg5[%19] : memref<16x!tpu.dma_semaphore, #tpu.memory_space<semaphore_mem>> -> memref<1x!tpu.dma_semaphore, #tpu.memory_space<semaphore_mem>>
      %23 = tpu.memref_squeeze %22 : memref<1x!tpu.dma_semaphore, #tpu.memory_space<semaphore_mem>> -> memref<!tpu.dma_semaphore, #tpu.memory_space<semaphore_mem>>
      tpu.enqueue_dma source(%20 : memref<1x128xf32, #tpu.memory_space<any>>) target(%21 : memref<1x128xf32, #tpu.memory_space<vmem>>) target_semaphore(%23 : memref<!tpu.dma_semaphore, #tpu.memory_space<semaphore_mem>>)
    }
    %c16_i32_1 = arith.constant 16 : i32
    %c0_i32_2 = arith.constant 0 : i32
    %c16_i32_3 = arith.constant 16 : i32
    %2 = arith.addi %c0_i32_2, %c16_i32_3 : i32
    %c1_i32_4 = arith.constant 1 : i32
    scf.for %arg6 = %c0_i32_2 to %2 step %c1_i32_4  : i32 {
      %c16_i32_9 = arith.constant 16 : i32
      %c0_i32_10 = arith.constant 0 : i32
      %7 = arith.cmpi eq, %c16_i32_9, %c0_i32_10 : i32
      %c1_i32_11 = arith.constant 1 : i32
      %8 = arith.select %7, %c1_i32_11, %c16_i32_9 : i32
      %9 = arith.remsi %arg6, %8 : i32
      %c0_i32_12 = arith.constant 0 : i32
      %10 = arith.cmpi ne, %9, %c0_i32_12 : i32
      %c0_i32_13 = arith.constant 0 : i32
      %11 = arith.cmpi slt, %9, %c0_i32_13 : i32
      %c0_i32_14 = arith.constant 0 : i32
      %12 = arith.cmpi slt, %8, %c0_i32_14 : i32
      %13 = arith.xori %11, %12 : i1
      %14 = arith.andi %13, %10 : i1
      %15 = arith.addi %9, %8 : i32
      %16 = arith.select %14, %15, %9 : i32
      %c0_i32_15 = arith.constant 0 : i32
      %c0_i32_16 = arith.constant 0 : i32
      %17 = tpu.memref_slice %arg2[%c0_i32_15, %c0_i32_16] : memref<64x128xf32, #tpu.memory_space<any>> -> memref<1x128xf32, #tpu.memory_space<any>>
      %c0_i32_17 = arith.constant 0 : i32
      %18 = tpu.memref_slice %arg4[%arg6, %c0_i32_17] : memref<16x128xf32, #tpu.memory_space<vmem>> -> memref<1x128xf32, #tpu.memory_space<vmem>>
      %19 = tpu.memref_slice %arg5[%16] : memref<16x!tpu.dma_semaphore, #tpu.memory_space<semaphore_mem>> -> memref<1x!tpu.dma_semaphore, #tpu.memory_space<semaphore_mem>>
      %20 = tpu.memref_squeeze %19 : memref<1x!tpu.dma_semaphore, #tpu.memory_space<semaphore_mem>> -> memref<!tpu.dma_semaphore, #tpu.memory_space<semaphore_mem>>
      tpu.wait_dma2 semaphore(%20 : memref<!tpu.dma_semaphore, #tpu.memory_space<semaphore_mem>>) src(%17 : memref<1x128xf32, #tpu.memory_space<any>>) dst(%18 : memref<1x128xf32, #tpu.memory_space<vmem>>)
      %c16_i32_18 = arith.constant 16 : i32
      %21 = arith.addi %arg6, %c16_i32_18 : i32
      %c16_i32_19 = arith.constant 16 : i32
      %22 = arith.cmpi slt, %21, %c16_i32_19 : i32
      %23 = arith.extui %22 : i1 to i32
      %c0_i32_20 = arith.constant 0 : i32
      %24 = arith.cmpi ne, %23, %c0_i32_20 : i32
      scf.if %24 {
        %c16_i32_21 = arith.constant 16 : i32
        %25 = arith.addi %arg6, %c16_i32_21 : i32
        %26 = arith.addi %0, %25 : i32
        %27 = arith.index_cast %26 : i32 to index
        %28 = memref.load %arg1[%27] : memref<16xi32, #tpu.memory_space<smem>>
        %c16_i32_22 = arith.constant 16 : i32
        %c0_i32_23 = arith.constant 0 : i32
        %29 = arith.cmpi eq, %c16_i32_22, %c0_i32_23 : i32
        %c1_i32_24 = arith.constant 1 : i32
        %30 = arith.select %29, %c1_i32_24, %c16_i32_22 : i32
        %31 = arith.remsi %25, %30 : i32
        %c0_i32_25 = arith.constant 0 : i32
        %32 = arith.cmpi ne, %31, %c0_i32_25 : i32
        %c0_i32_26 = arith.constant 0 : i32
        %33 = arith.cmpi slt, %31, %c0_i32_26 : i32
        %c0_i32_27 = arith.constant 0 : i32
        %34 = arith.cmpi slt, %30, %c0_i32_27 : i32
        %35 = arith.xori %33, %34 : i1
        %36 = arith.andi %35, %32 : i1
        %37 = arith.addi %31, %30 : i32
        %38 = arith.select %36, %37, %31 : i32
        %c0_i32_28 = arith.constant 0 : i32
        %39 = tpu.memref_slice %arg2[%28, %c0_i32_28] : memref<64x128xf32, #tpu.memory_space<any>> -> memref<1x128xf32, #tpu.memory_space<any>>
        %c0_i32_29 = arith.constant 0 : i32
        %40 = tpu.memref_slice %arg4[%25, %c0_i32_29] : memref<16x128xf32, #tpu.memory_space<vmem>> -> memref<1x128xf32, #tpu.memory_space<vmem>>
        %41 = tpu.memref_slice %arg5[%38] : memref<16x!tpu.dma_semaphore, #tpu.memory_space<semaphore_mem>> -> memref<1x!tpu.dma_semaphore, #tpu.memory_space<semaphore_mem>>
        %42 = tpu.memref_squeeze %41 : memref<1x!tpu.dma_semaphore, #tpu.memory_space<semaphore_mem>> -> memref<!tpu.dma_semaphore, #tpu.memory_space<semaphore_mem>>
        tpu.enqueue_dma source(%39 : memref<1x128xf32, #tpu.memory_space<any>>) target(%40 : memref<1x128xf32, #tpu.memory_space<vmem>>) target_semaphore(%42 : memref<!tpu.dma_semaphore, #tpu.memory_space<semaphore_mem>>)
      } else {
      }
    }
    %c16_i32_5 = arith.constant 16 : i32
    %c0 = arith.constant 0 : index
    %c0_6 = arith.constant 0 : index
    %3 = vector.load %arg4[%c0, %c0_6] : memref<16x128xf32, #tpu.memory_space<vmem>>, vector<16x128xf32>
    %cst = arith.constant 11.3137083 : f32
    %4 = vector.broadcast %cst : f32 to vector<16x128xf32>
    %5 = arith.mulf %3, %4 : vector<16x128xf32>
    %c0_7 = arith.constant 0 : index
    %c0_8 = arith.constant 0 : index
    %6 = vector.load %arg3[%c0_7, %c0_8] : memref<16x128xf32, #tpu.memory_space<vmem>>, vector<16x128xf32>
    tpu.vector_store %arg3[%c0_7, %c0_8], %5 {strides = array<i32>} : memref<16x128xf32, #tpu.memory_space<vmem>>, vector<16x128xf32>,
    return
  }
  func.func @transform_1(%arg0: i32, %arg1: memref<16xi32, #tpu.memory_space<smem>>) -> (i32, i32) {
    %c0_i32 = arith.constant 0 : i32
    %c0_i32_0 = arith.constant 0 : i32
    return %arg0, %c0_i32 : i32, i32
  }
}

</mosaic_0001>

<bundles_post_ra>
// kernel: tpu_custom_call.1
= control target key start
LH: loop header
LB: loop body
LE: loop exit
PB: predicated region body
PF: predicated region fallthrough
CT: control target
= control target key end

     0   :  { %s408_s9 = smov [#allocation5]   ;;  %s509_s0 = inlined_call_operand.hbm [shape: s32[16], index: 0, kind: input, shape index: {}]   ;;  %s510_s1 = inlined_call_operand.hbm [shape: f32[64,128], index: 1, kind: input, shape index: {}]   ;;  %s511_s2 = inlined_call_operand.hbm [shape: f32[16,128], index: 2, kind: output, shape index: {}]  }
   0x1   :  { %8 = dma.hbm_to_smem %s509_s0, 16, %s408_s9, [#allocation4] }
   0x2   :  { %394 = dma.done.wait [#allocation4], 16 }
   0x3   :  { %395 = vsyncadd [#allocation4], 4294967280 }
   0x4   :  { %10 = sfence }
   0x5   :  { %11 = vsyncpa [#allocation7], 0  ;;  %s431_s12 = smov 0  }
   0x6 LB: > { %s20_s13 = sld [smem:[#allocation5 + %s402_s12]]  ;;  %p21_p0 = scmp.lt.s32.totalorder %s402_s12, 0  ;;  %s402_s12 = sphi %s431_s12, %s18_s12  }
   0x7   : > { %s22_s14 = ssub.s32 0, %s402_s12  ;;  %s35_s17 = scalar_lea.vmem [#allocation2], %s402_s12 }
   0x8   : > { %s257_s0 = smin.u32 %s402_s12, %s22_s14  ;;  %s44_s18 = sshll.u32 %s35_s17, 4  ;;  %s45_s18 = int_to_ptr.vmem [resolvable:$true] %s44_s18 }
   0x9   : > { %s24_s15 = sand.u32 15, %s257_s0   ;;  %s320_s28 = scalar_lea.hbm %s510_s1, 1024 }
   0xa   : > { %s25_s16 = ssub.s32 0, %s24_s15 }
   0xb   : > { %s513_s16 = smov (!%p21_p0, %s25_s16), %s24_s15 }
   0xc   : > { %s260_s19 = sshll.u32 %s20_s13, 4  ;;  %p259_p1 = scmp.lt.s32.totalorder %s513_s16, 0 }
   0xd   : > { %s31_s20 = sadd.s32 16, %s513_s16  ;;  %s34_s23 = scalar_lea.hbm %s510_s1, %s260_s19 }
   0xe   : > { %s515_s20 = smov (!%p259_p1, %s31_s20), %s513_s16  ;;  %s318_s25 = scalar_lea.hbm %s34_s23, 16 }
   0xf   : > { %s36_s24 = scalar_lea.sflag [#allocation3], %s515_s20  ;;  %p319_p2 = scmp.ne.s32.totalorder %s34_s23, %s318_s25 }
  0x10   : > { %p321_p3 = scmp.lt.s32.totalorder %s34_s23, %s510_s1  ;;  %p322_p4 = scmp.lt.s32.totalorder %s320_s28, %s318_s25 }
  0x12   : > { %p323_p5 = por %p322_p4, %p321_p3 }
  0x14   : > { %p324_p6 = pnand %p323_p5, %p319_p2 }
  0x16   : > { %327 = shalt.err (!%p324_p6)  }
  0x17   : > { %s328_s5 = scalar_lea.vmem %s45_s18, 16  ;;  %s409_s6 = smov [#allocation2]  }
  0x18   : > { %p329_p7 = scmp.ne.s32.totalorder %s45_s18, %s328_s5  ;;  %s330_s7 = sshll.u32 %s409_s6, 4  ;;  %s454_s7 = int_to_ptr.vmem [resolvable:$false] %s330_s7 }
  0x19   : > { %s332_s8 = scalar_lea.vmem %s454_s7, 256  ;;  %p333_p8 = scmp.lt.s32.totalorder %s45_s18, %s454_s7 }
  0x1a   : > { %p334_p9 = scmp.lt.s32.totalorder %s332_s8, %s328_s5 }
  0x1c   : > { %p335_p10 = por %p334_p9, %p333_p8 }
  0x1e   : > { %p336_p11 = pnand %p335_p10, %p329_p7 }
  0x20   : > { %339 = shalt.err (!%p336_p11)  }
  0x21   : > { %47 = dma.hbm_to_vmem [thread:$0]  %s34_s23, 16, %s45_s18, %s36_s24 }
  0x22   : > { %s18_s12 = sadd.s32 1, %s402_s12  }
  0x23   : > { %p15_p12 = scmp.ge.s32.totalorder %s18_s12, 16  }
  0x24   :  { %s463_s9 = smov (%p15_p12), 0  }
  0x25   :  { %17 = sbr.rel (!%p15_p12) target bundleno = 6 (0x6), region = 68 }
  0x2a LB: > { %p54_p13 = scmp.lt.s32.totalorder %s406_s9, 0  ;;  %s55_s10 = ssub.s32 0, %s406_s9  ;;  %s406_s9 = sphi %s463_s9, %s53_s9  }
  0x2b   : > { %s261_s11 = smin.u32 %s406_s9, %s55_s10 }
  0x2c   : > { %s57_s13 = sand.u32 15, %s261_s11  }
  0x2d   : > { %s58_s14 = ssub.s32 0, %s57_s13 }
  0x2e   : > { %s517_s14 = smov (!%p54_p13, %s58_s14), %s57_s13 }
  0x2f   : > { %p263_p0 = scmp.lt.s32.totalorder %s517_s14, 0  ;;  %s64_s0 = sadd.s32 16, %s517_s14 }
  0x31   : > { %s519_s0 = smov (!%p263_p0, %s64_s0), %s517_s14 }
  0x32   : > { %s66_s12 = scalar_lea.sflag [#allocation3], %s519_s0 }
  0x33   : > { %396 = dma.done.wait %s66_s12, 16 }
  0x34   : > { %397 = vsyncadd %s66_s12, 4294967280  ;;  %s472_s15 = sadd.s32 16, %s406_s9  ;;  %s244_s23 = scalar_lea.vmem [#allocation2], %s406_s9 }
  0x35   : > { %p289_p1 = scmp.lt.s32.totalorder %s472_s15, 16  ;;  %p77_p2 = scmp.lt.s32.totalorder %s472_s15, 0 }
  0x36   : > { %s78_s16 = ssub.s32 0, %s472_s15  ;;  %s245_s24 = scalar_lea.vmem %s244_s23, 16 [#allocation2] }
  0x37   : > { %s286_s17 = scalar_select %p289_p1, [#allocation5], [#allocation14] }
  0x38   : > { %s287_s18 = scalar_select %p289_p1, %s472_s15, 0 }
  0x39   : > { %s265_s19 = smin.u32 %s78_s16, %s472_s15  ;;  %s100_s25 = sshll.u32 %s245_s24, 4  ;;  %s101_s25 = int_to_ptr.vmem [resolvable:$true] %s100_s25 }
  0x3a   : > { %s76_s20 = sld [smem:[%s286_s17 + %s287_s18]]  ;;  %s80_s21 = sand.u32 15, %s265_s19  }
  0x3b   : > { %s81_s22 = ssub.s32 0, %s80_s21 }
  0x3c   : > { %s521_s22 = smov (!%p77_p2, %s81_s22), %s80_s21 }
  0x3d   : > { %p267_p3 = scmp.lt.s32.totalorder %s521_s22, 0  ;;  %s87_s26 = sadd.s32 16, %s521_s22 }
  0x3f   : > { %s523_s26 = smov (!%p267_p3, %s87_s26), %s521_s22 }
  0x40   : > { %s268_s27 = sshll.u32 %s76_s20, 4  ;;  %s92_s4 = scalar_lea.sflag [#allocation3], %s523_s26 }
  0x41   : > { %s90_s3 = scalar_lea.hbm %s510_s1, %s268_s27 }
  0x42   : > { %s340_s5 = scalar_lea.hbm %s90_s3, 16  ;;  %p345_p7 = scmp.lt.s32.totalorder %s90_s3, %s510_s1 }
  0x43   : > { %p341_p4 = scmp.ne.s32.totalorder %s90_s3, %s340_s5  ;;  %p346_p8 = scmp.lt.s32.totalorder %s320_s28, %s340_s5 }
  0x45   : > { %p342_p5 = pnand %p341_p4, %p289_p1  ;;  %p347_p9 = por %p346_p8, %p345_p7 }
  0x47   : > { %p343_p6 = pneg %p342_p5 }
  0x49   : > { %p348_p10 = pnand %p347_p9, %p343_p6 }
  0x4b   : > { %351 = shalt.err (!%p348_p10)  }
  0x4c   : > { %s352_s14 = scalar_lea.vmem %s101_s25, 16  ;;  %p359_p0 = scmp.lt.s32.totalorder %s101_s25, %s454_s7 }
  0x4d   : > { %p353_p11 = scmp.ne.s32.totalorder %s101_s25, %s352_s14  ;;  %p360_p2 = scmp.lt.s32.totalorder %s332_s8, %s352_s14 }
  0x4f   : > { %p354_p12 = pnand %p353_p11, %p289_p1  ;;  %p361_p3 = por %p360_p2, %p359_p0 }
  0x51   : > { %p355_p13 = pneg %p354_p12 }
  0x53   : > { %p362_p4 = pnand %p361_p3, %p355_p13 }
  0x55   : > { %365 = shalt.err (!%p362_p4)  }
  0x56   : > { %288 = dma.hbm_to_vmem [thread:$0]  (%p289_p1), %s90_s3, 16, %s101_s25, %s92_s4 }
  0x57   : > { %s53_s9 = sadd.s32 1, %s406_s9  }
  0x58   : > { %p50_p5 = scmp.ge.s32.totalorder %s53_s9, 16  }
  0x59   :  { %v104_v0 = vld [vmem:[#allocation2] sm:$0xff] (%p50_p5)  ;;  %v105_v1 = vld [vmem:[#allocation2 + $0x8] sm:$0xff] (%p50_p5)  ;;  %s410_s0 = smov (%p50_p5), [#allocation6]  }
  0x5a   :  { %52 = sbr.rel (!%p50_p5) target bundleno = 42 (0x2a), region = 79  ;;  %v106_v2 = vmul.f32 (%p50_p5), 11.313708, %v104_v0  ;;  %v107_v3 = vmul.f32 (%p50_p5), 11.313708, %v105_v1  ;;  %s115_s12 = sshll.u32 (%p50_p5), %s410_s0, 4  ;;  %s116_s12 = int_to_ptr.vmem [resolvable:$true] %s115_s12 }
  0x5b   :  { %s366_s16 = scalar_lea.vmem (%p50_p5), %s116_s12, 256  ;;  %p371_p7 = scmp.lt.s32.totalorder (%p50_p5), %s116_s12, %s116_s12 }
  0x5c   :  { %108 = vst [vmem:[#allocation6] sm:$0xff] (%p50_p5), %v106_v2  ;;  %109 = vst [vmem:[#allocation6 + $0x8] sm:$0xff] (%p50_p5), %v107_v3  ;;  %p367_p6 = scmp.ne.s32.totalorder (%p50_p5), %s116_s12, %s366_s16  ;;  %p372_p8 = scmp.lt.s32.totalorder (%p50_p5), %s366_s16, %s366_s16 }
  0x5e   :  { %p373_p1 = por (%p50_p5), %p372_p8, %p371_p7 }
  0x60   :  { %p374_p9 = pnand %p373_p1, %p367_p6 }
  0x62   :  { %377 = shalt.err (!%p374_p9)
}
  0x63   :  { %s411_s15 = smov 128   ;;  %s412_s17 = smov 8  }
  0x64   :  { %121 = dma.vmem_to_hbm [thread:$0]  %s116_s12, 256, %s511_s2, [#allocation7], %s411_s15, %s411_s15, %s412_s17  }
  0x65   :  { %398 = dma.done.wait [#allocation7], 256  }
  0x66   :  { %399 = vsyncadd [#allocation7], 4294967040 }
  0x67   :  { %125 = vsyncpa [#allocation7], 1 }
  0x68   :  { %126 = vsyncmov [#allocation3] }
  0x6b   :  { %s127_s1 = vpop.sfrf %126 }
  0x6c   :  { %p269_p10 = scmp.ne.s32.totalorder %s127_s1, 0 }
  0x6e   :  { %131 = shalt.err (%p269_p10)  }
  0x6f   :  { %133 = vsyncmov [#allocation3 + $0x1] }
  0x72   :  { %s134_s28 = vpop.sfrf %133 }
  0x73   :  { %p270_p11 = scmp.ne.s32.totalorder %s134_s28, 0 }
  0x75   :  { %138 = shalt.err (%p270_p11)  }
  0x76   :  { %140 = vsyncmov [#allocation3 + $0x2] }
  0x79   :  { %s141_s7 = vpop.sfrf %140 }
  0x7a   :  { %p271_p12 = scmp.ne.s32.totalorder %s141_s7, 0 }
  0x7c   :  { %145 = shalt.err (%p271_p12)  }
  0x7d   :  { %147 = vsyncmov [#allocation3 + $0x3] }
  0x80   :  { %s148_s8 = vpop.sfrf %147 }
  0x81   :  { %p272_p13 = scmp.ne.s32.totalorder %s148_s8, 0 }
  0x83   :  { %152 = shalt.err (%p272_p13)  }
  0x84   :  { %154 = vsyncmov [#allocation3 + $0x4] }
  0x87   :  { %s155_s2 = vpop.sfrf %154 }
  0x88   :  { %p273_p0 = scmp.ne.s32.totalorder %s155_s2, 0 }
  0x8a   :  { %159 = shalt.err (%p273_p0)  }
  0x8b   :  { %161 = vsyncmov [#allocation3 + $0x5] }
  0x8e   :  { %s162_s19 = vpop.sfrf %161 }
  0x8f   :  { %p274_p2 = scmp.ne.s32.totalorder %s162_s19, 0 }
  0x91   :  { %166 = shalt.err (%p274_p2)  }
  0x92   :  { %168 = vsyncmov [#allocation3 + $0x6] }
  0x95   :  { %s169_s20 = vpop.sfrf %168 }
  0x96   :  { %p275_p3 = scmp.ne.s32.totalorder %s169_s20, 0 }
  0x98   :  { %173 = shalt.err (%p275_p3)  }
  0x99   :  { %175 = vsyncmov [#allocation3 + $0x7] }
  0x9c   :  { %s176_s21 = vpop.sfrf %175 }
  0x9d   :  { %p276_p4 = scmp.ne.s32.totalorder %s176_s21, 0 }
  0x9f   :  { %180 = shalt.err (%p276_p4)  }
  0xa0   :  { %182 = vsyncmov [#allocation3 + $0x8] }
  0xa3   :  { %s183_s22 = vpop.sfrf %182 }
  0xa4   :  { %p277_p5 = scmp.ne.s32.totalorder %s183_s22, 0 }
  0xa6   :  { %187 = shalt.err (%p277_p5)  }
  0xa7   :  { %189 = vsyncmov [#allocation3 + $0x9] }
  0xaa   :  { %s190_s23 = vpop.sfrf %189 }
  0xab   :  { %p278_p6 = scmp.ne.s32.totalorder %s190_s23, 0 }
  0xad   :  { %194 = shalt.err (%p278_p6)  }
  0xae   :  { %196 = vsyncmov [#allocation3 + $0xa] }
  0xb1   :  { %s197_s24 = vpop.sfrf %196 }
  0xb2   :  { %p279_p7 = scmp.ne.s32.totalorder %s197_s24, 0 }
  0xb4   :  { %201 = shalt.err (%p279_p7)  }
  0xb5   :  { %203 = vsyncmov [#allocation3 + $0xb] }
  0xb8   :  { %s204_s25 = vpop.sfrf %203 }
  0xb9   :  { %p280_p8 = scmp.ne.s32.totalorder %s204_s25, 0 }
  0xbb   :  { %208 = shalt.err (%p280_p8)  }
  0xbc   :  { %210 = vsyncmov [#allocation3 + $0xc] }
  0xbf   :  { %s211_s26 = vpop.sfrf %210 }
  0xc0   :  { %p281_p1 = scmp.ne.s32.totalorder %s211_s26, 0 }
  0xc2   :  { %215 = shalt.err (%p281_p1)  }
  0xc3   :  { %217 = vsyncmov [#allocation3 + $0xd] }
  0xc6   :  { %s218_s27 = vpop.sfrf %217 }
  0xc7   :  { %p282_p9 = scmp.ne.s32.totalorder %s218_s27, 0 }
  0xc9   :  { %222 = shalt.err (%p282_p9)  }
  0xca   :  { %224 = vsyncmov [#allocation3 + $0xe] }
  0xcd   :  { %s225_s29 = vpop.sfrf %224 }
  0xce   :  { %p283_p10 = scmp.ne.s32.totalorder %s225_s29, 0 }
  0xd0   :  { %229 = shalt.err (%p283_p10)  }
  0xd1   :  { %231 = vsyncmov [#allocation3 + $0xf] }
  0xd4   :  { %s232_s30 = vpop.sfrf %231 }
  0xd5   :  { %p284_p11 = scmp.ne.s32.totalorder %s232_s30, 0 }
  0xd7   :  { %236 = shalt.err (%p284_p11)  }

</bundles_post_ra>
